<compile_context>
chip_gen: v7x
topology: tpu7x:2x2x1
jax: 0.10.0
libtpu: 0.0.40
codegen_flags: <defaults>
</compile_context>

<pallas_src>
import math

import jax
import jax.numpy as jnp
from jax.experimental import pallas as pl
from jax.experimental.pallas import tpu as pltpu


def _round_up(x, m):
    return (x + m - 1) // m * m


# Conservative per-step VMEM budget: fits v5e's 16 MiB scoped default with
# headroom and is far under v7x's 64 MiB physical VMEM.
_DEFAULT_VMEM_BUDGET = 12 << 20
_VMEM_LIMIT_BYTES = 32 << 20


# ---------------------------------------------------------------------------
# One-time precompute (pure JAX, outside the kernel)
# ---------------------------------------------------------------------------
def _coefficients(w_plus, w_minus, v_plus, v_minus):
    """c_pos, c_neg (J,) f32 such that
       out[i] = sum_j relu(x[i,j])*c_pos[j] + relu(-x[i,j])*c_neg[j]
    exactly reproduces the reference forward."""
    K = w_plus.shape[1]
    scale = 1.0 / math.sqrt(K)
    wp = w_plus.astype(jnp.float32)
    wm = w_minus.astype(jnp.float32)
    vp = v_plus.astype(jnp.float32)
    vm = v_minus.astype(jnp.float32)
    c_pos = scale * (vp * jnp.sum(jnp.maximum(wp, 0.0), axis=1)
                     - vm * jnp.sum(jnp.maximum(wm, 0.0), axis=1))
    c_neg = scale * (vp * jnp.sum(jnp.maximum(-wp, 0.0), axis=1)
                     - vm * jnp.sum(jnp.maximum(-wm, 0.0), axis=1))
    return c_pos, c_neg


# ---------------------------------------------------------------------------
# Kernels
# ---------------------------------------------------------------------------
def _folded_kernel(x_ref, sd_ref, ss_ref, o_ref):
    # x_ref : (TR, 128)  folded batch tile; each row holds G = 128//J examples
    # sd_ref: (128, G)   block-diag selector carrying (c_pos - c_neg)/2
    # ss_ref: (128, G)   block-diag selector carrying (c_pos + c_neg)/2
    # o_ref : (TR, G)    o[r, g] = output of example r*G + g
    x = x_ref[...].astype(jnp.float32)
    o_ref[...] = (
        jnp.dot(x, sd_ref[...], preferred_element_type=jnp.float32)
        + jnp.dot(jnp.abs(x), ss_ref[...], preferred_element_type=jnp.float32))


def _rowwise_kernel(x_ref, cpos_ref, cneg_ref, o_ref):
    # Fallback when batch can't be folded into lanes (128 % J != 0).
    # x_ref: (TB, J), cpos/cneg: (1, J), o_ref: (1, TB) lane-dense.
    x = x_ref[...].astype(jnp.float32)
    contrib = (jnp.maximum(x, 0.0) * cpos_ref[...]
               + jnp.maximum(-x, 0.0) * cneg_ref[...])
    o_ref[...] = jnp.sum(contrib, axis=1)[None, :]


# ---------------------------------------------------------------------------
# Wrappers
# ---------------------------------------------------------------------------
def _forward_folded(x, c_pos, c_neg, vmem_budget_bytes):
    B, J = x.shape
    G = 128 // J
    x_bytes = jnp.dtype(x.dtype).itemsize

    # Block-diagonal selectors (128, G): bake the coefficients in so the
    # per-j multiply + per-example segment sum collapse into one MXU matmul.
    eye = jnp.eye(G, dtype=jnp.float32)
    d = ((c_pos - c_neg) * 0.5)
    s = ((c_pos + c_neg) * 0.5)
    s_diff = (eye[:, None, :] * d[None, :, None]).reshape(128, G)
    s_sum = (eye[:, None, :] * s[None, :, None]).reshape(128, G)

    # --- padding-aware tile choice ------------------------------------------
    # Per folded row: double-buffered x tile (128 lanes, native dtype) plus
    # double-buffered output tile (G lanes padded to 128 in VMEM, f32).
    row_bytes = 2 * 128 * x_bytes + 2 * 128 * 4
    rows_needed = pl.cdiv(B, G)
    max_rows = max(8, (vmem_budget_bytes // row_bytes) // 8 * 8)
    if rows_needed <= max_rows:
        block_rows = _round_up(rows_needed, 8)       # single fat grid step
    else:
        block_rows = max_rows
    n_rows = _round_up(rows_needed, block_rows)
    b_pad = n_rows * G

    if b_pad != B:
        x = jnp.pad(x, ((0, b_pad - B), (0, 0)))      # zero rows contribute 0
    x2 = x.reshape(n_rows, 128)                       # zero-copy row-major fold

    out2d = pl.pallas_call(
        _folded_kernel,
        out_shape=jax.ShapeDtypeStruct((n_rows, G), jnp.float32),
        grid_spec=pltpu.PrefetchScalarGridSpec(
            num_scalar_prefetch=0,
            grid=(n_rows // block_rows,),
            in_specs=[
                pl.BlockSpec((block_rows, 128), lambda i: (i, 0)),  # x tile
                pl.BlockSpec((128, G), lambda i: (0, 0)),           # S_diff
                pl.BlockSpec((128, G), lambda i: (0, 0)),           # S_sum
            ],
            out_specs=pl.BlockSpec((block_rows, G), lambda i: (i, 0)),
        ),
        compiler_params=pltpu.CompilerParams(
            dimension_semantics=("parallel",),
            vmem_limit_bytes=_VMEM_LIMIT_BYTES),
    )(x2, s_diff, s_sum)

    return out2d.reshape(b_pad)[:B]


def _forward_rowwise(x, c_pos, c_neg, vmem_budget_bytes):
    B, J = x.shape
    x_bytes = jnp.dtype(x.dtype).itemsize
    c_pos2 = c_pos.reshape(1, J)
    c_neg2 = c_neg.reshape(1, J)

    # Padding-aware accounting: lanes pad to 128, output (1, TB) pads to 8
    # sublanes, everything double-buffered.
    j_pad = _round_up(J, 128)
    row_bytes = 2 * j_pad * x_bytes + 2 * 8 * 4
    max_b = max(128, (vmem_budget_bytes // row_bytes) // 128 * 128)

    if B <= max_b:
        block_b = B                                   # single full block
        b_pad = B
    else:
        block_b = max_b
        b_pad = _round_up(B, block_b)
        if b_pad != B:
            x = jnp.pad(x, ((0, b_pad - B), (0, 0)))

    out2d = pl.pallas_call(
        _rowwise_kernel,
        out_shape=jax.ShapeDtypeStruct((1, b_pad), jnp.float32),
        grid_spec=pltpu.PrefetchScalarGridSpec(
            num_scalar_prefetch=0,
            grid=(b_pad // block_b,),
            in_specs=[
                pl.BlockSpec((block_b, J), lambda i: (i, 0)),
                pl.BlockSpec((1, J), lambda i: (0, 0)),
                pl.BlockSpec((1, J), lambda i: (0, 0)),
            ],
            out_specs=pl.BlockSpec((1, block_b), lambda i: (0, i)),
        ),
        compiler_params=pltpu.CompilerParams(
            dimension_semantics=("parallel",),
            vmem_limit_bytes=_VMEM_LIMIT_BYTES),
    )(x, c_pos2, c_neg2)
    return out2d.reshape(b_pad)[:B]


def scalarized_conv_forward(x, w_plus, w_minus, v_plus, v_minus, *,
                            vmem_budget_bytes=_DEFAULT_VMEM_BUDGET):
    """x: (B, patch_dim) any float dtype (streamed natively). Returns (B,) f32."""
    B, J = x.shape
    assert w_plus.shape[0] == J
    c_pos, c_neg = _coefficients(w_plus, w_minus, v_plus, v_minus)

    if J <= 128 and 128 % J == 0:
        return _forward_folded(x, c_pos, c_neg, vmem_budget_bytes)
    return _forward_rowwise(x, c_pos, c_neg, vmem_budget_bytes)


def reference_forward(x, w_plus, w_minus, v_plus, v_minus):
    """Pure-JAX reference mirroring the PyTorch forward exactly."""
    K = w_plus.shape[1]
    xf = x.astype(jnp.float32)
    xp = jax.nn.relu(jnp.einsum('ij,jk->ijk', xf, w_plus))
    xm = jax.nn.relu(jnp.einsum('ij,jk->ijk', xf, w_minus))
    xp = jnp.einsum('ijk,j->ijk', xp, v_plus)
    xm = jnp.einsum('ijk,j->ijk', xm, v_minus)
    return (1.0 / math.sqrt(K)) * (jnp.sum(xp, axis=(1, 2)) - jnp.sum(xm, axis=(1, 2)))


if __name__ == "__main__":
    # Small, deterministic setup consistent with the module:
    #   batched_x: (B, patch_dim), weights: (patch_dim, num_filters)
    B, patch_dim, num_filters = 256, 16, 32

    key = jax.random.PRNGKey(0)
    kx, kwp, kwm, kvp, kvm = jax.random.split(key, 5)

    x = jax.random.normal(kx, (B, patch_dim), dtype=jnp.float32)
    # reset_parameters(): w ~ U(-0.5, 0.5), v ~ U(0, 0.5)
    w_plus = jax.random.uniform(kwp, (patch_dim, num_filters),
                                minval=-0.5, maxval=0.5, dtype=jnp.float32)
    w_minus = jax.random.uniform(kwm, (patch_dim, num_filters),
                                 minval=-0.5, maxval=0.5, dtype=jnp.float32)
    v_plus = jax.random.uniform(kvp, (patch_dim,), minval=0.0, maxval=0.5,
                                dtype=jnp.float32)
    v_minus = jax.random.uniform(kvm, (patch_dim,), minval=0.0, maxval=0.5,
                                 dtype=jnp.float32)

    out = scalarized_conv_forward(x, w_plus, w_minus, v_plus, v_minus)
    out = jax.block_until_ready(out)

    ref = reference_forward(x, w_plus, w_minus, v_plus, v_minus)
    assert out.shape == (B,)
    # Tolerance covers possible reduced-precision MXU input handling of f32
    # matmuls; the algebraic rewrite itself is exact.
    assert jnp.allclose(out, ref, atol=1e-2, rtol=1e-2), (
        float(jnp.max(jnp.abs(out - ref))))

    print("KERNEL_OK")
</pallas_src>

<mosaic_0001>
module attributes {stable_mosaic.version = 11 : i64} {
  func.func @_folded_kernel(%arg0: i32, %arg1: memref<32x128xf32, #tpu.memory_space<vmem>>, %arg2: memref<128x8xf32, #tpu.memory_space<vmem>>, %arg3: memref<128x8xf32, #tpu.memory_space<vmem>>, %arg4: memref<32x8xf32, #tpu.memory_space<vmem>>) attributes {dimension_semantics = [#tpu.dimension_semantics<parallel>], iteration_bounds = array<i64: 1>, scalar_prefetch = 0 : i64, scratch_operands = 0 : i64, tpu.core_type = #tpu.core_type<tc>, window_params = [{transform_indices = @transform_0, window_bounds = array<i64: 32, 128>}, {pipeline_mode = #tpu.pipeline_mode<synchronous>, transform_indices = @transform_1, window_bounds = array<i64: 128, 8>}, {pipeline_mode = #tpu.pipeline_mode<synchronous>, transform_indices = @transform_2, window_bounds = array<i64: 128, 8>}, {transform_indices = @transform_3, window_bounds = array<i64: 32, 8>}]} {
    %c0 = arith.constant 0 : index
    %c0_0 = arith.constant 0 : index
    %0 = vector.load %arg1[%c0, %c0_0] : memref<32x128xf32, #tpu.memory_space<vmem>>, vector<32x128xf32>
    %c0_1 = arith.constant 0 : index
    %c0_2 = arith.constant 0 : index
    %1 = vector.load %arg2[%c0_1, %c0_2] : memref<128x8xf32, #tpu.memory_space<vmem>>, vector<128x8xf32>
    %cst = arith.constant dense<0.000000e+00> : vector<32x8xf32>
    %2 = tpu.matmul %0, %1, %cst {dimension_numbers = #tpu.dot_dimension_numbers<[1], [0], [0], [1], [0, 0, 1, 1], [], []>} : vector<32x128xf32>, vector<128x8xf32>, vector<32x8xf32> -> vector<32x8xf32>
    %3 = math.absf %0 : vector<32x128xf32>
    %c0_3 = arith.constant 0 : index
    %c0_4 = arith.constant 0 : index
    %4 = vector.load %arg3[%c0_3, %c0_4] : memref<128x8xf32, #tpu.memory_space<vmem>>, vector<128x8xf32>
    %cst_5 = arith.constant dense<0.000000e+00> : vector<32x8xf32>
    %5 = tpu.matmul %3, %4, %cst_5 {dimension_numbers = #tpu.dot_dimension_numbers<[1], [0], [0], [1], [0, 0, 1, 1], [], []>} : vector<32x128xf32>, vector<128x8xf32>, vector<32x8xf32> -> vector<32x8xf32>
    %6 = arith.addf %2, %5 : vector<32x8xf32>
    %c0_6 = arith.constant 0 : index
    %c0_7 = arith.constant 0 : index
    %7 = vector.load %arg4[%c0_6, %c0_7] : memref<32x8xf32, #tpu.memory_space<vmem>>, vector<32x8xf32>
    tpu.vector_store %arg4[%c0_6, %c0_7], %6 {strides = array<i32>} : memref<32x8xf32, #tpu.memory_space<vmem>>, vector<32x8xf32>,
    return
  }
  func.func @transform_0(%arg0: i32) -> (i32, i32) {
    %c0_i32 = arith.constant 0 : i32
    %c0_i32_0 = arith.constant 0 : i32
    return %arg0, %c0_i32 : i32, i32
  }
  func.func @transform_1(%arg0: i32) -> (i32, i32) {
    %c0_i32 = arith.constant 0 : i32
    %c0_i32_0 = arith.constant 0 : i32
    %c0_i32_1 = arith.constant 0 : i32
    return %c0_i32, %c0_i32_0 : i32, i32
  }
  func.func @transform_2(%arg0: i32) -> (i32, i32) {
    %c0_i32 = arith.constant 0 : i32
    %c0_i32_0 = arith.constant 0 : i32
    %c0_i32_1 = arith.constant 0 : i32
    return %c0_i32, %c0_i32_0 : i32, i32
  }
  func.func @transform_3(%arg0: i32) -> (i32, i32) {
    %c0_i32 = arith.constant 0 : i32
    %c0_i32_0 = arith.constant 0 : i32
    return %arg0, %c0_i32 : i32, i32
  }
}

</mosaic_0001>

<bundles_post_ra>
// kernel: tpu_custom_call.1
= control target key start
LH: loop header
LB: loop body
LE: loop exit
PB: predicated region body
PF: predicated region fallthrough
CT: control target
= control target key end

     0   :  { %vm224_vm0 = vcmask 64512   ;;  %s557_s2 = inlined_call_operand.vmem [shape: f32[128,8], index: 2, kind: input, shape index: {}]   ;;  %s558_s1 = inlined_call_operand.vmem [shape: f32[128,8], index: 1, kind: input, shape index: {}]   ;;  %s559_s0 = inlined_call_operand.vmem [shape: f32[32,128], index: 0, kind: input, shape index: {}]   ;;  %s560_s3 = inlined_call_operand.vmem [shape: f32[32,8], index: 3, kind: output, shape index: {}]  }
   0x1   :  { %v38_v0 = vld [vmem:[%s557_s2] sm:$0xff]  ;;  %v39_v1 = vld [vmem:[%s557_s2 + $0x8] sm:$0xff]  ;;  %v40_v5 = vld [vmem:[%s557_s2 + $0x10] sm:$0xff] }
   0x2   :  { %v18_v2 = vld [vmem:[%s558_s1] sm:$0xff]  ;;  %v349_v3 = vpack.c.bf16 %v39_v1, %v38_v0  ;;  %v19_v4 = vld [vmem:[%s558_s1 + $0x8] sm:$0xff]  ;;  %v41_v6 = vld [vmem:[%s557_s2 + $0x18] sm:$0xff] }
   0x3   :  { %v381_v7 = vpack.c.bf16 %v19_v4, %v18_v2  ;;  %v353_v8 = vpack.c.bf16 %v41_v6, %v40_v5  ;;  %v20_v9 = vld [vmem:[%s558_s1 + $0x10] sm:$0xff]  ;;  %v21_v10 = vld [vmem:[%s558_s1 + $0x18] sm:$0xff]  ;;  %v42_v11 = vld [vmem:[%s557_s2 + $0x20] sm:$0xff] }
   0x4   :  { %350 = vmatprep.subr.bf16.mxu1 %v349_v3  ;;  %v385_v12 = vpack.c.bf16 %v21_v10, %v20_v9  ;;  %v43_v13 = vld [vmem:[%s557_s2 + $0x28] sm:$0xff]  ;;  %v22_v14 = vld [vmem:[%s558_s1 + $0x20] sm:$0xff]  ;;  %v44_v18 = vld [vmem:[%s557_s2 + $0x30] sm:$0xff] }
   0x5   :  { %v23_v15 = vld [vmem:[%s558_s1 + $0x28] sm:$0xff]  ;;  %382 = vmatprep.subr.bf16.mxu0 %v381_v7  ;;  %352 = vmatpush3.bf16.msra.mxu1 %v349_v3  ;;  %v357_v16 = vpack.c.bf16 %v43_v13, %v42_v11  ;;  %v45_v19 = vld [vmem:[%s557_s2 + $0x38] sm:$0xff]  ;;  %v24_v20 = vld [vmem:[%s558_s1 + $0x30] sm:$0xff] }
   0x6   :  { %384 = vmatpush3.bf16.msra.mxu0 %v381_v7  ;;  %354 = vmatprep.subr.bf16.mxu1 %v353_v8  ;;  %v389_v17 = vpack.c.bf16 %v23_v15, %v22_v14  ;;  %v25_v21 = vld [vmem:[%s558_s1 + $0x38] sm:$0xff]  ;;  %v361_v22 = vpack.c.bf16 %v45_v19, %v44_v18  ;;  %v46_v24 = vld [vmem:[%s557_s2 + $0x40] sm:$0xff]  ;;  %v47_v25 = vld [vmem:[%s557_s2 + $0x48] sm:$0xff] }
   0x7   :  { %386 = vmatprep.subr.bf16.mxu0 %v385_v12  ;;  %v393_v23 = vpack.c.bf16 %v25_v21, %v24_v20  ;;  %v14_v26 = vld [vmem:[%s559_s0] sm:$0xff]  ;;  %v27_v28 = vld [vmem:[%s558_s1 + $0x48] sm:$0xff]  ;;  %v365_v30 = vpack.c.bf16 %v47_v25, %v46_v24  ;;  %v48_v32 = vld [vmem:[%s557_s2 + $0x50] sm:$0xff] }
   0x8   :  { %v26_v27 = vld [vmem:[%s558_s1 + $0x40] sm:$0xff]  ;;  %v34_v29 = vand.u32 2147483647, %v14_v26  ;;  %343 = vmatprep.mubr.f32.mxu0 %v14_v26  ;;  %v49_v33 = vld [vmem:[%s557_s2 + $0x58] sm:$0xff]  ;;  %v28_v34 = vld [vmem:[%s558_s1 + $0x50] sm:$0xff] }
   0x9   :  { %356 = vmatpush3.bf16.msra.mxu1 %v353_v8  ;;  %v397_v31 = vpack.c.bf16 %v27_v28, %v26_v27  ;;  %v29_v35 = vld [vmem:[%s558_s1 + $0x58] sm:$0xff]  ;;  %v369_v36 = vpack.c.bf16 %v49_v33, %v48_v32  ;;  %v50_v38 = vld [vmem:[%s557_s2 + $0x60] sm:$0xff]  ;;  %v51_v39 = vld [vmem:[%s557_s2 + $0x68] sm:$0xff] }
   0xa   :  { %388 = vmatpush3.bf16.msra.mxu0 %v385_v12  ;;  %358 = vmatprep.subr.bf16.mxu1 %v357_v16  ;;  %v401_v37 = vpack.c.bf16 %v29_v35, %v28_v34  ;;  %v30_v40 = vld [vmem:[%s558_s1 + $0x60] sm:$0xff]  ;;  %v31_v41 = vld [vmem:[%s558_s1 + $0x68] sm:$0xff]  ;;  %v373_v42 = vpack.c.bf16 %v51_v39, %v50_v38  ;;  %v52_v44 = vld [vmem:[%s557_s2 + $0x70] sm:$0xff] }
   0xb   :  { %390 = vmatprep.subr.bf16.mxu0 %v389_v17  ;;  %305 = vmatprep.mubr.f32.mxu1 %v34_v29  ;;  %v405_v43 = vpack.c.bf16 %v31_v41, %v30_v40  ;;  %v53_v45 = vld [vmem:[%s557_s2 + $0x78] sm:$0xff]  ;;  %v32_v46 = vld [vmem:[%s558_s1 + $0x70] sm:$0xff]  ;;  %v15_v50 = vld [vmem:[%s559_s0 + $0x8] sm:$0xff] }
   0xc   :  { %v33_v47 = vld [vmem:[%s558_s1 + $0x78] sm:$0xff]  ;;  %v377_v48 = vpack.c.bf16 %v53_v45, %v52_v44  ;;  %v16_v51 = vld [vmem:[%s559_s0 + $0x10] sm:$0xff]  ;;  %v35_v52 = vand.u32 2147483647, %v15_v50 }
   0xd   :  { %360 = vmatpush3.bf16.msra.mxu1 %v357_v16  ;;  %v409_v49 = vpack.c.bf16 %v33_v47, %v32_v46  ;;  %v36_v53 = vand.u32 2147483647, %v16_v51  ;;  %v17_v54 = vld [vmem:[%s559_s0 + $0x18] sm:$0xff] }
   0xe   :  { %392 = vmatpush3.bf16.msra.mxu0 %v389_v17  ;;  %362 = vmatprep.subr.bf16.mxu1 %v361_v22  ;;  %v37_v55 = vand.u32 2147483647, %v17_v54 }
   0xf   :  { %394 = vmatprep.subr.bf16.mxu0 %v393_v23 }
  0x11   :  { %364 = vmatpush3.bf16.msra.mxu1 %v361_v22 }
  0x12   :  { %396 = vmatpush3.bf16.msra.mxu0 %v393_v23  ;;  %366 = vmatprep.subr.bf16.mxu1 %v365_v30 }
  0x13   :  { %398 = vmatprep.subr.bf16.mxu0 %v397_v31 }
  0x15   :  { %368 = vmatpush3.bf16.msra.mxu1 %v365_v30 }
  0x16   :  { %400 = vmatpush3.bf16.msra.mxu0 %v397_v31  ;;  %370 = vmatprep.subr.bf16.mxu1 %v369_v36 }
  0x17   :  { %402 = vmatprep.subr.bf16.mxu0 %v401_v37 }
  0x19   :  { %372 = vmatpush3.bf16.msra.mxu1 %v369_v36 }
  0x1a   :  { %404 = vmatpush3.bf16.msra.mxu0 %v401_v37  ;;  %374 = vmatprep.subr.bf16.mxu1 %v373_v42 }
  0x1b   :  { %406 = vmatprep.subr.bf16.mxu0 %v405_v43 }
  0x1d   :  { %376 = vmatpush3.bf16.msra.mxu1 %v373_v42 }
  0x1e   :  { %408 = vmatpush3.bf16.msra.mxu0 %v405_v43  ;;  %378 = vmatprep.subr.bf16.mxu1 %v377_v48 }
  0x1f   :  { %410 = vmatprep.subr.bf16.mxu0 %v409_v49 }
  0x21   :  { %380 = vmatpush3.bf16.msra.mxu1 %v377_v48 }
  0x22   :  { %412 = vmatpush3.bf16.msra.mxu0 %v409_v49 }
  0x24   :  { %306 = vmatmul.mubr.f32.vlgmr.msra.gmra.mrb[0].mxu1 %v35_v52 }
  0x25   :  { %344 = vmatmul.mubr.f32.vlgmr.msra.gmra.mrb[0].mxu0 %v15_v50  ;;  %308 = vmatprep.mubr.f32.mxu1 %v36_v53 }
  0x26   :  { %346 = vmatprep.mubr.f32.mxu0 %v16_v51 }
  0x28   :  { %309 = vmatmul.mubr.f32.gmra.mrb[2].mxu1 %v37_v55 }
  0x29   :  { %347 = vmatmul.mubr.f32.gmra.mrb[2].mxu0 %v17_v54 }
  0xf7   :  { %v307_v56 = vpop.f32.mrb[0].mxu1 }
  0xf8   :  { %v345_v57 = vpop.f32.mrb[0].mxu0  ;;  %v120_v58 = vpop.f32.mrb[1].mxu1 }
  0xf9   :  { %v211_v59 = vadd.f32 %v345_v57, %v307_v56  ;;  %v205_v60 = vpop.f32.mrb[1].mxu0 }
  0xfa   :  { %v206_v61 = vadd.f32 %v205_v60, %v120_v58 }
  0xfb   :  { %226 = vst.msk [vmem:[%s560_s3 + $0x8] sm:$0xff] %vm224_vm0, %v211_v59  ;;  %v310_v62 = vpop.f32.mrb[2].mxu1 }
  0xfc   :  { %225 = vst.msk [vmem:[%s560_s3] sm:$0xff] %vm224_vm0, %v206_v61  ;;  %v348_v63 = vpop.f32.mrb[2].mxu0  ;;  %v130_v0 = vpop.f32.mrb[3].mxu1 }
  0xfd   :  { %v221_v1 = vadd.f32 %v348_v63, %v310_v62  ;;  %v215_v2 = vpop.f32.mrb[3].mxu0 }
  0xfe   :  { %v216_v3 = vadd.f32 %v215_v2, %v130_v0 }
  0xff   :  { %228 = vst.msk [vmem:[%s560_s3 + $0x18] sm:$0xff] %vm224_vm0, %v221_v1 }
 0x100   :  { %227 = vst.msk [vmem:[%s560_s3 + $0x10] sm:$0xff] %vm224_vm0, %v216_v3 }

</bundles_post_ra>
